<compile_context>
chip_gen: v7x
topology: tpu7x:2x2x1
jax: 0.10.0
libtpu: 0.0.40
codegen_flags: <defaults>
</compile_context>

<pallas_src>
import functools

import jax
import jax.numpy as jnp
from jax import lax
from jax.experimental import pallas as pl
from jax.experimental.pallas import tpu as pltpu

_BIG = 1e30


def _round_up(x, m):
    return (x + m - 1) // m * m


def _triplet_kernel(margin, strategy, n_valid, unroll,
                    lab_sm_ref,                       # SMEM (Bp,) int32  (scalar prefetch)
                    e_full_ref,                       # (Bp, Dp) compute dtype
                    sqcol_ref, labcol_ref,            # (Bp, 1)  f32 / int32
                    sqrow_ref, labrow_ref,            # (1, TA)  f32 / int32 (tile anchors)
                    loss_ref, cnt_ref,                # (1, 8, 128) f32 outputs
                    distT_vmem):                      # (Bp, TA) f32 scratch
    """One anchor tile: distances vs all samples + mining + partial reduction.

    distT[n, a] = squared distance(sample n, anchor a):  anchors -> lanes,
    samples -> sublanes, so d_ap for positive index p is a cheap dynamic
    sublane-row read instead of a one-hot gather.
    """
    bp = e_full_ref.shape[0]
    ta = sqrow_ref.shape[-1]
    tile = pl.program_id(0)
    row0 = pl.multiple_of(tile * ta, ta)
    margin_f = jnp.float32(margin)

    e_f = e_full_ref[...]                              # (Bp, Dp)
    e_t = e_full_ref[pl.ds(row0, ta), :]               # (TA, Dp) — tile sliced in-kernel

    # Gram matrix, transpose-free on the MXU (contract feature dim of both operands).
    gramT = lax.dot_general(e_f, e_t, (((1,), (1,)), ((), ())),
                            preferred_element_type=jnp.float32)     # (Bp, TA)

    sq_n = sqcol_ref[...]                              # (Bp, 1)
    sq_a = sqrow_ref[...]                              # (1, TA)
    distT = jnp.maximum(sq_n + sq_a - 2.0 * gramT, 0.0)             # F.relu; (Bp, TA)
    # (the diagonal is never read through the masks below, so no explicit zeroing)

    lab_n = labcol_ref[...]                            # (Bp, 1) int32
    lab_a = labrow_ref[...]                            # (1, TA) int32
    n_idx = lax.broadcasted_iota(jnp.int32, (bp, ta), 0)             # sample index n
    a_idx = lax.broadcasted_iota(jnp.int32, (bp, ta), 1) + row0      # global anchor index
    valid = (n_idx < n_valid) & (a_idx < n_valid)
    same = lab_n == lab_a
    posT = same & (n_idx != a_idx) & valid             # n is a positive for anchor a
    negT = (~same) & valid                             # n is a negative for anchor a

    n_pos = jnp.sum(posT.astype(jnp.float32), axis=0, keepdims=True)    # (1, TA)
    n_neg = jnp.sum(negT.astype(jnp.float32), axis=0, keepdims=True)    # (1, TA)
    has_neg = n_neg > 0.0                                               # (1, TA)
    dan_masked = jnp.where(negT, distT, _BIG)          # negatives only, else +BIG
    d_hard = jnp.min(dan_masked, axis=0, keepdims=True)                 # (1, TA)

    a_row = lax.broadcasted_iota(jnp.int32, (1, ta), 1) + row0          # (1, TA)
    anchor_ok = a_row < n_valid

    if strategy == "hard":
        # already O(B^2): triplet (a, p) kept iff anchor has a negative and d_hard < d_ap
        sel = posT & has_neg & (d_hard < distT)
        pair_loss = jnp.maximum(distT - d_hard + margin_f, 0.0)
        loss_sum = jnp.sum(jnp.where(sel, pair_loss, 0.0))
        count = jnp.sum(jnp.where(sel, 1.0, 0.0))

    elif strategy == "all":
        count = jnp.sum(n_pos * n_neg)                 # analytic triplet count
        distT_vmem[...] = distT

        def body(p, acc):                              # loop over positive index p
            d_ap = distT_vmem[pl.ds(p, 1), :]          # (1, TA): dist(anchor, p)
            lab_p = lab_sm_ref[p]                      # scalar label of p (SMEM)
            is_pos = (lab_a == lab_p) & (a_row != p) & anchor_ok
            # relu(d_ap - d_an + margin) over all negatives n; non-negatives are +BIG
            # in dan_masked so they contribute exactly 0 after the relu.
            contrib = jnp.maximum((d_ap + margin_f) - dan_masked, 0.0)
            csum = jnp.sum(contrib, axis=0, keepdims=True)               # (1, TA)
            return acc + jnp.where(is_pos, csum, 0.0)

        acc = lax.fori_loop(0, n_valid, body, jnp.zeros((1, ta), jnp.float32),
                            unroll=unroll)
        loss_sum = jnp.sum(acc)

    else:  # semi-hard
        count = jnp.sum(jnp.where(has_neg, n_pos, 0.0))
        distT_vmem[...] = distT

        def body(p, acc):                              # loop over positive index p
            d_ap = distT_vmem[pl.ds(p, 1), :]          # (1, TA)
            lab_p = lab_sm_ref[p]
            is_pos = (lab_a == lab_p) & (a_row != p) & anchor_ok
            upper = d_ap + margin_f
            in_band = (dan_masked > d_ap) & (dan_masked < upper)   # +BIG fails < upper
            d_semi = jnp.min(jnp.where(in_band, dan_masked, _BIG),
                             axis=0, keepdims=True)    # closest semi-hard candidate
            any_semi = d_semi < 0.5 * _BIG
            d_an = jnp.where(any_semi, d_semi, d_hard)             # fallback: hardest neg
            pair_ok = is_pos & has_neg
            contrib = jnp.where(pair_ok,
                                jnp.maximum(d_ap - d_an + margin_f, 0.0), 0.0)
            return acc + contrib

        acc = lax.fori_loop(0, n_valid, body, jnp.zeros((1, ta), jnp.float32),
                            unroll=unroll)
        loss_sum = jnp.sum(acc)

    # lane-dense partial outputs (one (8,128) slab per anchor tile)
    loss_ref[...] = jnp.full(loss_ref.shape, loss_sum, jnp.float32)
    cnt_ref[...] = jnp.full(cnt_ref.shape, count, jnp.float32)


def triplet_loss_with_mining(embeddings, labels, margin=1.0,
                             mining_strategy="semi-hard",
                             compute_dtype=jnp.bfloat16):
    """JAX wrapper reproducing TripletLossWithMining.forward -> (loss, metrics).

    compute_dtype=jnp.bfloat16 (default) halves embedding DMA/VMEM and uses the native
    bf16 MXU path for the Gram matmul (distance/mining math stays f32).  Pass
    compute_dtype=jnp.float32 for exact numerical parity with the PyTorch module.
    """
    if mining_strategy not in ("all", "hard", "semi-hard"):
        raise ValueError(f"Mining strategy '{mining_strategy}' not supported.")

    B, D = embeddings.shape
    labels = labels.astype(jnp.int32)

    # --- pad to TPU-friendly shapes (feature dim -> x128, batch -> x8) ---
    Dp = _round_up(max(D, 1), 128)
    B8 = _round_up(B, 8)
    if B8 <= 8:
        TA = B8                                     # single tiny tile
    elif B8 <= 256:
        TA = _round_up((B8 + 1) // 2, 8)            # >=2 tiles -> both v7x TensorCores busy
    else:
        TA = 128
    Bp = _round_up(B8, TA)
    num_tiles = Bp // TA

    e_pad = jnp.zeros((Bp, Dp), jnp.float32).at[:B, :D].set(embeddings.astype(jnp.float32))
    e_c = e_pad.astype(compute_dtype)
    # squared norms from the *rounded* embeddings so sq and the Gram matrix agree
    e_sq_src = e_c.astype(jnp.float32)
    sq = jnp.sum(e_sq_src * e_sq_src, axis=1)       # (Bp,) f32
    lab_pad = jnp.full((Bp,), -1, jnp.int32).at[:B].set(labels)

    sq_col = sq[:, None]                            # (Bp, 1)
    lab_col = lab_pad[:, None]                      # (Bp, 1)
    sq_rows = sq.reshape(num_tiles, 1, TA)          # per-tile anchor rows (lane dim = TA)
    lab_rows = lab_pad.reshape(num_tiles, 1, TA)

    unroll = True if B <= 16 else 4                 # small unroll: VMEM-friendly on v7x

    kernel = functools.partial(_triplet_kernel, float(margin), mining_strategy, B, unroll)

    # single-buffer the grid-invariant full-embedding block when it is big
    esz = jnp.dtype(compute_dtype).itemsize
    e_bytes = Bp * Dp * esz
    e_spec_kwargs = {}
    if e_bytes > (4 << 20):
        e_spec_kwargs = dict(pipeline_mode=pl.Buffered(1))

    # modest, generation-safe VMEM request (v7x has only 64 MiB physical per core)
    vmem_need = 2 * e_bytes + 10 * Bp * TA * 4 + (4 << 20)
    vmem_limit = int(min(max(vmem_need, 32 << 20), 56 << 20))

    grid_spec = pltpu.PrefetchScalarGridSpec(
        num_scalar_prefetch=1,                      # labels -> SMEM scalar reads in the loop
        grid=(num_tiles,),
        in_specs=[
            pl.BlockSpec((Bp, Dp), lambda i, lab: (0, 0), **e_spec_kwargs),
            pl.BlockSpec((Bp, 1), lambda i, lab: (0, 0)),        # sq (all samples, sublane)
            pl.BlockSpec((Bp, 1), lambda i, lab: (0, 0)),        # labels (all samples, sublane)
            pl.BlockSpec((None, 1, TA), lambda i, lab: (i, 0, 0)),   # sq (tile anchors, lane)
            pl.BlockSpec((None, 1, TA), lambda i, lab: (i, 0, 0)),   # labels (tile anchors, lane)
        ],
        out_specs=(
            pl.BlockSpec((1, 8, 128), lambda i, lab: (i, 0, 0)),
            pl.BlockSpec((1, 8, 128), lambda i, lab: (i, 0, 0)),
        ),
        scratch_shapes=[pltpu.VMEM((Bp, TA), jnp.float32)],      # distT (row-readable)
    )

    loss_parts, cnt_parts = pl.pallas_call(
        kernel,
        out_shape=(
            jax.ShapeDtypeStruct((num_tiles, 8, 128), jnp.float32),
            jax.ShapeDtypeStruct((num_tiles, 8, 128), jnp.float32),
        ),
        grid_spec=grid_spec,
        compiler_params=pltpu.CompilerParams(
            dimension_semantics=("parallel",),
            vmem_limit_bytes=vmem_limit,
        ),
    )(lab_pad, e_c, sq_col, lab_col, sq_rows, lab_rows)

    loss_sum = jnp.sum(loss_parts[:, 0, 0])
    count_i = jnp.sum(cnt_parts[:, 0, 0].astype(jnp.int32))     # exact per-tile -> int32 sum
    count_f = count_i.astype(jnp.float32)
    loss = jnp.where(count_i > 0, loss_sum / jnp.maximum(count_f, 1.0), 0.0)
    metrics = {"num_triplets": count_i}
    return loss, metrics


def _reference(embeddings, labels, margin, strategy):
    """Pure-JAX reference mirroring the (deterministic) kernel semantics."""
    e = embeddings.astype(jnp.float32)
    B = e.shape[0]
    sq = jnp.sum(e * e, axis=1)
    gram = lax.dot_general(e, e, (((1,), (1,)), ((), ())),
                           preferred_element_type=jnp.float32)
    dist = jnp.maximum(sq[:, None] + sq[None, :] - 2.0 * gram, 0.0)
    same = labels[:, None] == labels[None, :]
    eye = jnp.eye(B, dtype=bool)
    pos_m = same & ~eye
    neg_m = ~same
    has_neg = neg_m.any(axis=1, keepdims=True)
    d_hard = jnp.min(jnp.where(neg_m, dist, _BIG), axis=1, keepdims=True)
    if strategy == "all":
        l3 = jnp.maximum(dist[:, :, None] - dist[:, None, :] + margin, 0.0)
        m3 = pos_m[:, :, None] & neg_m[:, None, :]
        s = jnp.sum(jnp.where(m3, l3, 0.0))
        c = jnp.sum(m3.astype(jnp.float32))
    elif strategy == "hard":
        valid = pos_m & has_neg & (d_hard < dist)
        s = jnp.sum(jnp.where(valid, jnp.maximum(dist - d_hard + margin, 0.0), 0.0))
        c = jnp.sum(valid.astype(jnp.float32))
    else:  # semi-hard: minimum-distance candidate inside the band (kernel semantics)
        dan3 = dist[:, None, :]
        dap3 = dist[:, :, None]
        semi = neg_m[:, None, :] & (dan3 > dap3) & (dan3 < dap3 + margin)
        d_semi = jnp.min(jnp.where(semi, dan3, _BIG), axis=2)
        any_semi = d_semi < 0.5 * _BIG
        d_an = jnp.where(any_semi, d_semi, d_hard)
        valid = pos_m & has_neg
        s = jnp.sum(jnp.where(valid, jnp.maximum(dist - d_an + margin, 0.0), 0.0))
        c = jnp.sum(valid.astype(jnp.float32))
    loss = jnp.where(c > 0.0, s / jnp.maximum(c, 1.0), 0.0)
    return loss, c


if __name__ == "__main__":
    key = jax.random.PRNGKey(0)
    ok = True

    configs = [
        # (B, D, labels, loss_rel_tol, hard_count_tol)
        (8, 32, jnp.array([0, 0, 1, 1, 2, 2, 3, 3], dtype=jnp.int32), 2e-3, 0),
        (6, 20, jnp.array([0, 0, 1, 1, 2, 2], dtype=jnp.int32), 2e-3, 0),       # padding path
        (8, 32, jnp.zeros((8,), dtype=jnp.int32), 2e-3, 0),                     # no negatives -> 0 triplets
        (160, 24, jnp.repeat(jnp.arange(40, dtype=jnp.int32), 4), 2e-2, 2),     # multi-tile path
    ]

    for idx, (B, D, labels, tol, hard_cnt_tol) in enumerate(configs):
        k = jax.random.fold_in(key, idx)
        embeddings = jax.random.normal(k, (B, D), dtype=jnp.float32)
        for strategy in ("semi-hard", "hard", "all"):
            loss, metrics = triplet_loss_with_mining(
                embeddings, labels, margin=1.0, mining_strategy=strategy,
                compute_dtype=jnp.float32)
            loss = jax.block_until_ready(loss)
            ref_loss, ref_cnt = _reference(embeddings, labels, 1.0, strategy)
            rl = float(ref_loss)
            if abs(float(loss) - rl) > tol * max(1.0, abs(rl)):
                ok = False
                print(f"LOSS MISMATCH [B={B} {strategy}]: kernel={float(loss)} ref={rl}")
            c_tol = hard_cnt_tol if strategy == "hard" else 0
            if abs(int(metrics["num_triplets"]) - int(ref_cnt)) > c_tol:
                ok = False
                print(f"COUNT MISMATCH [B={B} {strategy}]: "
                      f"{int(metrics['num_triplets'])} vs {int(ref_cnt)}")

    # default (bf16 Gram) path: smoke-test that it compiles, runs and stays finite
    emb = jax.random.normal(jax.random.fold_in(key, 99), (32, 64), dtype=jnp.float32)
    labs = jnp.repeat(jnp.arange(8, dtype=jnp.int32), 4)
    for strategy in ("semi-hard", "hard", "all"):
        loss_bf, m_bf = triplet_loss_with_mining(emb, labs, margin=1.0,
                                                 mining_strategy=strategy)
        loss_bf = jax.block_until_ready(loss_bf)
        if not bool(jnp.isfinite(loss_bf)) or int(m_bf["num_triplets"]) < 0:
            ok = False
            print(f"BF16 PATH FAILED [{strategy}]: loss={float(loss_bf)}")

    if ok:
        print("KERNEL_OK")
</pallas_src>

<mosaic_0001>
module attributes {stable_mosaic.version = 11 : i64} {
  func.func @_triplet_kernel(%arg0: i32, %arg1: memref<8xi32, #tpu.memory_space<smem>>, %arg2: memref<8x128xf32, #tpu.memory_space<vmem>>, %arg3: memref<8x1xf32, #tpu.memory_space<vmem>>, %arg4: memref<8x1xi32, #tpu.memory_space<vmem>>, %arg5: memref<1x1x8xf32, #tpu.memory_space<vmem>>, %arg6: memref<1x1x8xi32, #tpu.memory_space<vmem>>, %arg7: memref<1x8x128xf32, #tpu.memory_space<vmem>>, %arg8: memref<1x8x128xf32, #tpu.memory_space<vmem>>, %arg9: memref<8x8xf32, #tpu.memory_space<vmem>>) attributes {dimension_semantics = [#tpu.dimension_semantics<parallel>], iteration_bounds = array<i64: 1>, scalar_prefetch = 1 : i64, scratch_operands = 1 : i64, tpu.core_type = #tpu.core_type<tc>, window_params = [{pipeline_mode = #tpu.pipeline_mode<synchronous>, transform_indices = @transform_0, window_bounds = array<i64: 8, 128>}, {pipeline_mode = #tpu.pipeline_mode<synchronous>, transform_indices = @transform_1, window_bounds = array<i64: 8, 1>}, {pipeline_mode = #tpu.pipeline_mode<synchronous>, transform_indices = @transform_2, window_bounds = array<i64: 8, 1>}, {transform_indices = @transform_3, window_bounds = array<i64: 1, 1, 8>}, {transform_indices = @transform_4, window_bounds = array<i64: 1, 1, 8>}, {transform_indices = @transform_5, window_bounds = array<i64: 1, 8, 128>}, {transform_indices = @transform_6, window_bounds = array<i64: 1, 8, 128>}]} {
    %c8_i32 = arith.constant 8 : i32
    %0 = arith.muli %arg0, %c8_i32 : i32
    %1 = tpu.assume_multiple %0, 8 : i32
    %c0 = arith.constant 0 : index
    %c0_0 = arith.constant 0 : index
    %2 = vector.load %arg2[%c0, %c0_0] : memref<8x128xf32, #tpu.memory_space<vmem>>, vector<8x128xf32>
    %3 = arith.index_cast %1 : i32 to index
    %c0_1 = arith.constant 0 : index
    %4 = vector.load %arg2[%3, %c0_1] : memref<8x128xf32, #tpu.memory_space<vmem>>, vector<8x128xf32>
    %cst = arith.constant dense<0.000000e+00> : vector<8x8xf32>
    %5 = tpu.matmul %2, %4, %cst {dimension_numbers = #tpu.dot_dimension_numbers<[1], [1], [0], [0], [0, 0, 1, 0], [], []>} : vector<8x128xf32>, vector<8x128xf32>, vector<8x8xf32> -> vector<8x8xf32>
    %c0_2 = arith.constant 0 : index
    %c0_3 = arith.constant 0 : index
    %6 = vector.load %arg3[%c0_2, %c0_3] : memref<8x1xf32, #tpu.memory_space<vmem>>, vector<8x1xf32>
    %c0_4 = arith.constant 0 : index
    %c0_5 = arith.constant 0 : index
    %c0_6 = arith.constant 0 : index
    %7 = vector.load %arg5[%c0_4, %c0_5, %c0_6] : memref<1x1x8xf32, #tpu.memory_space<vmem>>, vector<1x1x8xf32>
    %8 = vector.shape_cast %7 : vector<1x1x8xf32> to vector<1x8xf32>
    %9 = vector.broadcast %6 : vector<8x1xf32> to vector<8x8xf32>
    %10 = vector.broadcast %8 : vector<1x8xf32> to vector<8x8xf32>
    %11 = arith.addf %9, %10 : vector<8x8xf32>
    %cst_7 = arith.constant 2.000000e+00 : f32
    %12 = vector.broadcast %cst_7 : f32 to vector<8x8xf32>
    %13 = arith.mulf %12, %5 : vector<8x8xf32>
    %14 = arith.subf %11, %13 : vector<8x8xf32>
    %cst_8 = arith.constant 0.000000e+00 : f32
    %15 = vector.broadcast %cst_8 : f32 to vector<8x8xf32>
    %16 = arith.maximumf %14, %15 : vector<8x8xf32>
    %c0_9 = arith.constant 0 : index
    %c0_10 = arith.constant 0 : index
    %17 = vector.load %arg4[%c0_9, %c0_10] : memref<8x1xi32, #tpu.memory_space<vmem>>, vector<8x1xi32>
    %c0_11 = arith.constant 0 : index
    %c0_12 = arith.constant 0 : index
    %c0_13 = arith.constant 0 : index
    %18 = vector.load %arg6[%c0_11, %c0_12, %c0_13] : memref<1x1x8xi32, #tpu.memory_space<vmem>>, vector<1x1x8xi32>
    %19 = vector.shape_cast %18 : vector<1x1x8xi32> to vector<1x8xi32>
    %20 = tpu.iota {dimensions = array<i32: 0>} : vector<8x8xi32>
    %21 = tpu.iota {dimensions = array<i32: 1>} : vector<8x8xi32>
    %22 = vector.broadcast %1 : i32 to vector<8x8xi32>
    %23 = arith.addi %21, %22 : vector<8x8xi32>
    %c8_i32_14 = arith.constant 8 : i32
    %24 = vector.broadcast %c8_i32_14 : i32 to vector<8x8xi32>
    %25 = arith.cmpi slt, %20, %24 : vector<8x8xi32>
    %c8_i32_15 = arith.constant 8 : i32
    %26 = vector.broadcast %c8_i32_15 : i32 to vector<8x8xi32>
    %27 = arith.cmpi slt, %23, %26 : vector<8x8xi32>
    %28 = arith.andi %25, %27 : vector<8x8xi1>
    %29 = vector.broadcast %17 : vector<8x1xi32> to vector<8x8xi32>
    %30 = vector.broadcast %19 : vector<1x8xi32> to vector<8x8xi32>
    %31 = arith.cmpi eq, %29, %30 : vector<8x8xi32>
    %32 = arith.cmpi ne, %20, %23 : vector<8x8xi32>
    %33 = arith.andi %31, %32 : vector<8x8xi1>
    %34 = arith.andi %33, %28 : vector<8x8xi1>
    %cst_16 = arith.constant dense<true> : vector<8x8xi1>
    %35 = arith.xori %31, %cst_16 : vector<8x8xi1>
    %36 = arith.andi %35, %28 : vector<8x8xi1>
    %37 = arith.extui %34 : vector<8x8xi1> to vector<8x8xi32>
    %38 = arith.sitofp %37 : vector<8x8xi32> to vector<8x8xf32>
    %cst_17 = arith.constant dense<0.000000e+00> : vector<8xf32>
    %39 = vector.multi_reduction <add>, %38, %cst_17 [0] : vector<8x8xf32> to vector<8xf32>
    %40 = vector.shape_cast %39 : vector<8xf32> to vector<1x8xf32>
    %41 = arith.extui %36 : vector<8x8xi1> to vector<8x8xi32>
    %42 = arith.sitofp %41 : vector<8x8xi32> to vector<8x8xf32>
    %cst_18 = arith.constant dense<0.000000e+00> : vector<8xf32>
    %43 = vector.multi_reduction <add>, %42, %cst_18 [0] : vector<8x8xf32> to vector<8xf32>
    %44 = vector.shape_cast %43 : vector<8xf32> to vector<1x8xf32>
    %cst_19 = arith.constant 0.000000e+00 : f32
    %45 = vector.broadcast %cst_19 : f32 to vector<1x8xf32>
    %46 = arith.cmpf ogt, %44, %45 : vector<1x8xf32>
    %cst_20 = arith.constant 1.000000e+30 : f32
    %47 = vector.broadcast %cst_20 : f32 to vector<8x8xf32>
    %48 = arith.select %36, %16, %47 : vector<8x8xi1>, vector<8x8xf32>
    %cst_21 = arith.constant dense<0x7F800000> : vector<8xf32>
    %49 = vector.multi_reduction <minimumf>, %48, %cst_21 [0] : vector<8x8xf32> to vector<8xf32>
    %50 = vector.shape_cast %49 : vector<8xf32> to vector<1x8xf32>
    %51 = tpu.iota {dimensions = array<i32: 1>} : vector<1x8xi32>
    %52 = vector.broadcast %1 : i32 to vector<1x8xi32>
    %53 = arith.addi %51, %52 : vector<1x8xi32>
    %c8_i32_22 = arith.constant 8 : i32
    %54 = vector.broadcast %c8_i32_22 : i32 to vector<1x8xi32>
    %55 = arith.cmpi slt, %53, %54 : vector<1x8xi32>
    %cst_23 = arith.constant 0.000000e+00 : f32
    %56 = vector.broadcast %cst_23 : f32 to vector<1x8xf32>
    %57 = arith.select %46, %40, %56 : vector<1x8xi1>, vector<1x8xf32>
    %58 = vector.shape_cast %57 : vector<1x8xf32> to vector<1x1x8xf32>
    %cst_24 = arith.constant dense<0.000000e+00> : vector<1xf32>
    %59 = vector.multi_reduction <add>, %58, %cst_24 [1, 2] : vector<1x1x8xf32> to vector<1xf32>
    %60 = vector.shape_cast %59 : vector<1xf32> to vector<1x1x1xf32>
    %61 = vector.extract %60[0, 0, 0] : f32 from vector<1x1x1xf32>
    %c0_25 = arith.constant 0 : index
    %c0_26 = arith.constant 0 : index
    %62 = vector.load %arg9[%c0_25, %c0_26] : memref<8x8xf32, #tpu.memory_space<vmem>>, vector<8x8xf32>
    tpu.vector_store %arg9[%c0_25, %c0_26], %16 {strides = array<i32>} : memref<8x8xf32, #tpu.memory_space<vmem>>, vector<8x8xf32>,
    %cst_27 = arith.constant 0.000000e+00 : f32
    %63 = vector.broadcast %cst_27 : f32 to vector<1x8xf32>
    %cst_28 = arith.constant 1.000000e+00 : f32
    %c0_i32 = arith.constant 0 : i32
    %64 = arith.index_cast %c0_i32 : i32 to index
    %c0_29 = arith.constant 0 : index
    %65 = vector.load %arg9[%64, %c0_29] : memref<8x8xf32, #tpu.memory_space<vmem>>, vector<1x8xf32>
    %66 = arith.index_cast %c0_i32 : i32 to index
    %67 = memref.load %arg1[%66] : memref<8xi32, #tpu.memory_space<smem>>
    %68 = vector.broadcast %67 : i32 to vector<1x8xi32>
    %69 = arith.cmpi eq, %19, %68 : vector<1x8xi32>
    %70 = vector.broadcast %c0_i32 : i32 to vector<1x8xi32>
    %71 = arith.cmpi ne, %53, %70 : vector<1x8xi32>
    %72 = arith.andi %69, %71 : vector<1x8xi1>
    %73 = arith.andi %72, %55 : vector<1x8xi1>
    %74 = vector.broadcast %cst_28 : f32 to vector<1x8xf32>
    %75 = arith.addf %65, %74 : vector<1x8xf32>
    %76 = vector.broadcast %65 : vector<1x8xf32> to vector<8x8xf32>
    %77 = arith.cmpf ogt, %48, %76 : vector<8x8xf32>
    %78 = vector.broadcast %75 : vector<1x8xf32> to vector<8x8xf32>
    %79 = arith.cmpf olt, %48, %78 : vector<8x8xf32>
    %80 = arith.andi %77, %79 : vector<8x8xi1>
    %cst_30 = arith.constant 1.000000e+30 : f32
    %81 = vector.broadcast %cst_30 : f32 to vector<8x8xf32>
    %82 = arith.select %80, %48, %81 : vector<8x8xi1>, vector<8x8xf32>
    %cst_31 = arith.constant dense<0x7F800000> : vector<8xf32>
    %83 = vector.multi_reduction <minimumf>, %82, %cst_31 [0] : vector<8x8xf32> to vector<8xf32>
    %84 = vector.shape_cast %83 : vector<8xf32> to vector<1x8xf32>
    %cst_32 = arith.constant 5.000000e+29 : f32
    %85 = vector.broadcast %cst_32 : f32 to vector<1x8xf32>
    %86 = arith.cmpf olt, %84, %85 : vector<1x8xf32>
    %87 = arith.select %86, %84, %50 : vector<1x8xi1>, vector<1x8xf32>
    %88 = arith.andi %73, %46 : vector<1x8xi1>
    %89 = arith.subf %65, %87 : vector<1x8xf32>
    %90 = vector.broadcast %cst_28 : f32 to vector<1x8xf32>
    %91 = arith.addf %89, %90 : vector<1x8xf32>
    %cst_33 = arith.constant 0.000000e+00 : f32
    %92 = vector.broadcast %cst_33 : f32 to vector<1x8xf32>
    %93 = arith.maximumf %91, %92 : vector<1x8xf32>
    %cst_34 = arith.constant 0.000000e+00 : f32
    %94 = vector.broadcast %cst_34 : f32 to vector<1x8xf32>
    %95 = arith.select %88, %93, %94 : vector<1x8xi1>, vector<1x8xf32>
    %96 = arith.addf %63, %95 : vector<1x8xf32>
    %c1_i32 = arith.constant 1 : i32
    %97 = arith.index_cast %c1_i32 : i32 to index
    %c0_35 = arith.constant 0 : index
    %98 = vector.load %arg9[%97, %c0_35] : memref<8x8xf32, #tpu.memory_space<vmem>>, vector<1x8xf32>
    %99 = arith.index_cast %c1_i32 : i32 to index
    %100 = memref.load %arg1[%99] : memref<8xi32, #tpu.memory_space<smem>>
    %101 = vector.broadcast %100 : i32 to vector<1x8xi32>
    %102 = arith.cmpi eq, %19, %101 : vector<1x8xi32>
    %103 = vector.broadcast %c1_i32 : i32 to vector<1x8xi32>
    %104 = arith.cmpi ne, %53, %103 : vector<1x8xi32>
    %105 = arith.andi %102, %104 : vector<1x8xi1>
    %106 = arith.andi %105, %55 : vector<1x8xi1>
    %107 = vector.broadcast %cst_28 : f32 to vector<1x8xf32>
    %108 = arith.addf %98, %107 : vector<1x8xf32>
    %109 = vector.broadcast %98 : vector<1x8xf32> to vector<8x8xf32>
    %110 = arith.cmpf ogt, %48, %109 : vector<8x8xf32>
    %111 = vector.broadcast %108 : vector<1x8xf32> to vector<8x8xf32>
    %112 = arith.cmpf olt, %48, %111 : vector<8x8xf32>
    %113 = arith.andi %110, %112 : vector<8x8xi1>
    %cst_36 = arith.constant 1.000000e+30 : f32
    %114 = vector.broadcast %cst_36 : f32 to vector<8x8xf32>
    %115 = arith.select %113, %48, %114 : vector<8x8xi1>, vector<8x8xf32>
    %cst_37 = arith.constant dense<0x7F800000> : vector<8xf32>
    %116 = vector.multi_reduction <minimumf>, %115, %cst_37 [0] : vector<8x8xf32> to vector<8xf32>
    %117 = vector.shape_cast %116 : vector<8xf32> to vector<1x8xf32>
    %cst_38 = arith.constant 5.000000e+29 : f32
    %118 = vector.broadcast %cst_38 : f32 to vector<1x8xf32>
    %119 = arith.cmpf olt, %117, %118 : vector<1x8xf32>
    %120 = arith.select %119, %117, %50 : vector<1x8xi1>, vector<1x8xf32>
    %121 = arith.andi %106, %46 : vector<1x8xi1>
    %122 = arith.subf %98, %120 : vector<1x8xf32>
    %123 = vector.broadcast %cst_28 : f32 to vector<1x8xf32>
    %124 = arith.addf %122, %123 : vector<1x8xf32>
    %cst_39 = arith.constant 0.000000e+00 : f32
    %125 = vector.broadcast %cst_39 : f32 to vector<1x8xf32>
    %126 = arith.maximumf %124, %125 : vector<1x8xf32>
    %cst_40 = arith.constant 0.000000e+00 : f32
    %127 = vector.broadcast %cst_40 : f32 to vector<1x8xf32>
    %128 = arith.select %121, %126, %127 : vector<1x8xi1>, vector<1x8xf32>
    %129 = arith.addf %96, %128 : vector<1x8xf32>
    %c2_i32 = arith.constant 2 : i32
    %130 = arith.index_cast %c2_i32 : i32 to index
    %c0_41 = arith.constant 0 : index
    %131 = vector.load %arg9[%130, %c0_41] : memref<8x8xf32, #tpu.memory_space<vmem>>, vector<1x8xf32>
    %132 = arith.index_cast %c2_i32 : i32 to index
    %133 = memref.load %arg1[%132] : memref<8xi32, #tpu.memory_space<smem>>
    %134 = vector.broadcast %133 : i32 to vector<1x8xi32>
    %135 = arith.cmpi eq, %19, %134 : vector<1x8xi32>
    %136 = vector.broadcast %c2_i32 : i32 to vector<1x8xi32>
    %137 = arith.cmpi ne, %53, %136 : vector<1x8xi32>
    %138 = arith.andi %135, %137 : vector<1x8xi1>
    %139 = arith.andi %138, %55 : vector<1x8xi1>
    %140 = vector.broadcast %cst_28 : f32 to vector<1x8xf32>
    %141 = arith.addf %131, %140 : vector<1x8xf32>
    %142 = vector.broadcast %131 : vector<1x8xf32> to vector<8x8xf32>
    %143 = arith.cmpf ogt, %48, %142 : vector<8x8xf32>
    %144 = vector.broadcast %141 : vector<1x8xf32> to vector<8x8xf32>
    %145 = arith.cmpf olt, %48, %144 : vector<8x8xf32>
    %146 = arith.andi %143, %145 : vector<8x8xi1>
    %cst_42 = arith.constant 1.000000e+30 : f32
    %147 = vector.broadcast %cst_42 : f32 to vector<8x8xf32>
    %148 = arith.select %146, %48, %147 : vector<8x8xi1>, vector<8x8xf32>
    %cst_43 = arith.constant dense<0x7F800000> : vector<8xf32>
    %149 = vector.multi_reduction <minimumf>, %148, %cst_43 [0] : vector<8x8xf32> to vector<8xf32>
    %150 = vector.shape_cast %149 : vector<8xf32> to vector<1x8xf32>
    %cst_44 = arith.constant 5.000000e+29 : f32
    %151 = vector.broadcast %cst_44 : f32 to vector<1x8xf32>
    %152 = arith.cmpf olt, %150, %151 : vector<1x8xf32>
    %153 = arith.select %152, %150, %50 : vector<1x8xi1>, vector<1x8xf32>
    %154 = arith.andi %139, %46 : vector<1x8xi1>
    %155 = arith.subf %131, %153 : vector<1x8xf32>
    %156 = vector.broadcast %cst_28 : f32 to vector<1x8xf32>
    %157 = arith.addf %155, %156 : vector<1x8xf32>
    %cst_45 = arith.constant 0.000000e+00 : f32
    %158 = vector.broadcast %cst_45 : f32 to vector<1x8xf32>
    %159 = arith.maximumf %157, %158 : vector<1x8xf32>
    %cst_46 = arith.constant 0.000000e+00 : f32
    %160 = vector.broadcast %cst_46 : f32 to vector<1x8xf32>
    %161 = arith.select %154, %159, %160 : vector<1x8xi1>, vector<1x8xf32>
    %162 = arith.addf %129, %161 : vector<1x8xf32>
    %c3_i32 = arith.constant 3 : i32
    %163 = arith.index_cast %c3_i32 : i32 to index
    %c0_47 = arith.constant 0 : index
    %164 = vector.load %arg9[%163, %c0_47] : memref<8x8xf32, #tpu.memory_space<vmem>>, vector<1x8xf32>
    %165 = arith.index_cast %c3_i32 : i32 to index
    %166 = memref.load %arg1[%165] : memref<8xi32, #tpu.memory_space<smem>>
    %167 = vector.broadcast %166 : i32 to vector<1x8xi32>
    %168 = arith.cmpi eq, %19, %167 : vector<1x8xi32>
    %169 = vector.broadcast %c3_i32 : i32 to vector<1x8xi32>
    %170 = arith.cmpi ne, %53, %169 : vector<1x8xi32>
    %171 = arith.andi %168, %170 : vector<1x8xi1>
    %172 = arith.andi %171, %55 : vector<1x8xi1>
    %173 = vector.broadcast %cst_28 : f32 to vector<1x8xf32>
    %174 = arith.addf %164, %173 : vector<1x8xf32>
    %175 = vector.broadcast %164 : vector<1x8xf32> to vector<8x8xf32>
    %176 = arith.cmpf ogt, %48, %175 : vector<8x8xf32>
    %177 = vector.broadcast %174 : vector<1x8xf32> to vector<8x8xf32>
    %178 = arith.cmpf olt, %48, %177 : vector<8x8xf32>
    %179 = arith.andi %176, %178 : vector<8x8xi1>
    %cst_48 = arith.constant 1.000000e+30 : f32
    %180 = vector.broadcast %cst_48 : f32 to vector<8x8xf32>
    %181 = arith.select %179, %48, %180 : vector<8x8xi1>, vector<8x8xf32>
    %cst_49 = arith.constant dense<0x7F800000> : vector<8xf32>
    %182 = vector.multi_reduction <minimumf>, %181, %cst_49 [0] : vector<8x8xf32> to vector<8xf32>
    %183 = vector.shape_cast %182 : vector<8xf32> to vector<1x8xf32>
    %cst_50 = arith.constant 5.000000e+29 : f32
    %184 = vector.broadcast %cst_50 : f32 to vector<1x8xf32>
    %185 = arith.cmpf olt, %183, %184 : vector<1x8xf32>
    %186 = arith.select %185, %183, %50 : vector<1x8xi1>, vector<1x8xf32>
    %187 = arith.andi %172, %46 : vector<1x8xi1>
    %188 = arith.subf %164, %186 : vector<1x8xf32>
    %189 = vector.broadcast %cst_28 : f32 to vector<1x8xf32>
    %190 = arith.addf %188, %189 : vector<1x8xf32>
    %cst_51 = arith.constant 0.000000e+00 : f32
    %191 = vector.broadcast %cst_51 : f32 to vector<1x8xf32>
    %192 = arith.maximumf %190, %191 : vector<1x8xf32>
    %cst_52 = arith.constant 0.000000e+00 : f32
    %193 = vector.broadcast %cst_52 : f32 to vector<1x8xf32>
    %194 = arith.select %187, %192, %193 : vector<1x8xi1>, vector<1x8xf32>
    %195 = arith.addf %162, %194 : vector<1x8xf32>
    %c4_i32 = arith.constant 4 : i32
    %196 = arith.index_cast %c4_i32 : i32 to index
    %c0_53 = arith.constant 0 : index
    %197 = vector.load %arg9[%196, %c0_53] : memref<8x8xf32, #tpu.memory_space<vmem>>, vector<1x8xf32>
    %198 = arith.index_cast %c4_i32 : i32 to index
    %199 = memref.load %arg1[%198] : memref<8xi32, #tpu.memory_space<smem>>
    %200 = vector.broadcast %199 : i32 to vector<1x8xi32>
    %201 = arith.cmpi eq, %19, %200 : vector<1x8xi32>
    %202 = vector.broadcast %c4_i32 : i32 to vector<1x8xi32>
    %203 = arith.cmpi ne, %53, %202 : vector<1x8xi32>
    %204 = arith.andi %201, %203 : vector<1x8xi1>
    %205 = arith.andi %204, %55 : vector<1x8xi1>
    %206 = vector.broadcast %cst_28 : f32 to vector<1x8xf32>
    %207 = arith.addf %197, %206 : vector<1x8xf32>
    %208 = vector.broadcast %197 : vector<1x8xf32> to vector<8x8xf32>
    %209 = arith.cmpf ogt, %48, %208 : vector<8x8xf32>
    %210 = vector.broadcast %207 : vector<1x8xf32> to vector<8x8xf32>
    %211 = arith.cmpf olt, %48, %210 : vector<8x8xf32>
    %212 = arith.andi %209, %211 : vector<8x8xi1>
    %cst_54 = arith.constant 1.000000e+30 : f32
    %213 = vector.broadcast %cst_54 : f32 to vector<8x8xf32>
    %214 = arith.select %212, %48, %213 : vector<8x8xi1>, vector<8x8xf32>
    %cst_55 = arith.constant dense<0x7F800000> : vector<8xf32>
    %215 = vector.multi_reduction <minimumf>, %214, %cst_55 [0] : vector<8x8xf32> to vector<8xf32>
    %216 = vector.shape_cast %215 : vector<8xf32> to vector<1x8xf32>
    %cst_56 = arith.constant 5.000000e+29 : f32
    %217 = vector.broadcast %cst_56 : f32 to vector<1x8xf32>
    %218 = arith.cmpf olt, %216, %217 : vector<1x8xf32>
    %219 = arith.select %218, %216, %50 : vector<1x8xi1>, vector<1x8xf32>
    %220 = arith.andi %205, %46 : vector<1x8xi1>
    %221 = arith.subf %197, %219 : vector<1x8xf32>
    %222 = vector.broadcast %cst_28 : f32 to vector<1x8xf32>
    %223 = arith.addf %221, %222 : vector<1x8xf32>
    %cst_57 = arith.constant 0.000000e+00 : f32
    %224 = vector.broadcast %cst_57 : f32 to vector<1x8xf32>
    %225 = arith.maximumf %223, %224 : vector<1x8xf32>
    %cst_58 = arith.constant 0.000000e+00 : f32
    %226 = vector.broadcast %cst_58 : f32 to vector<1x8xf32>
    %227 = arith.select %220, %225, %226 : vector<1x8xi1>, vector<1x8xf32>
    %228 = arith.addf %195, %227 : vector<1x8xf32>
    %c5_i32 = arith.constant 5 : i32
    %229 = arith.index_cast %c5_i32 : i32 to index
    %c0_59 = arith.constant 0 : index
    %230 = vector.load %arg9[%229, %c0_59] : memref<8x8xf32, #tpu.memory_space<vmem>>, vector<1x8xf32>
    %231 = arith.index_cast %c5_i32 : i32 to index
    %232 = memref.load %arg1[%231] : memref<8xi32, #tpu.memory_space<smem>>
    %233 = vector.broadcast %232 : i32 to vector<1x8xi32>
    %234 = arith.cmpi eq, %19, %233 : vector<1x8xi32>
    %235 = vector.broadcast %c5_i32 : i32 to vector<1x8xi32>
    %236 = arith.cmpi ne, %53, %235 : vector<1x8xi32>
    %237 = arith.andi %234, %236 : vector<1x8xi1>
    %238 = arith.andi %237, %55 : vector<1x8xi1>
    %239 = vector.broadcast %cst_28 : f32 to vector<1x8xf32>
    %240 = arith.addf %230, %239 : vector<1x8xf32>
    %241 = vector.broadcast %230 : vector<1x8xf32> to vector<8x8xf32>
    %242 = arith.cmpf ogt, %48, %241 : vector<8x8xf32>
    %243 = vector.broadcast %240 : vector<1x8xf32> to vector<8x8xf32>
    %244 = arith.cmpf olt, %48, %243 : vector<8x8xf32>
    %245 = arith.andi %242, %244 : vector<8x8xi1>
    %cst_60 = arith.constant 1.000000e+30 : f32
    %246 = vector.broadcast %cst_60 : f32 to vector<8x8xf32>
    %247 = arith.select %245, %48, %246 : vector<8x8xi1>, vector<8x8xf32>
    %cst_61 = arith.constant dense<0x7F800000> : vector<8xf32>
    %248 = vector.multi_reduction <minimumf>, %247, %cst_61 [0] : vector<8x8xf32> to vector<8xf32>
    %249 = vector.shape_cast %248 : vector<8xf32> to vector<1x8xf32>
    %cst_62 = arith.constant 5.000000e+29 : f32
    %250 = vector.broadcast %cst_62 : f32 to vector<1x8xf32>
    %251 = arith.cmpf olt, %249, %250 : vector<1x8xf32>
    %252 = arith.select %251, %249, %50 : vector<1x8xi1>, vector<1x8xf32>
    %253 = arith.andi %238, %46 : vector<1x8xi1>
    %254 = arith.subf %230, %252 : vector<1x8xf32>
    %255 = vector.broadcast %cst_28 : f32 to vector<1x8xf32>
    %256 = arith.addf %254, %255 : vector<1x8xf32>
    %cst_63 = arith.constant 0.000000e+00 : f32
    %257 = vector.broadcast %cst_63 : f32 to vector<1x8xf32>
    %258 = arith.maximumf %256, %257 : vector<1x8xf32>
    %cst_64 = arith.constant 0.000000e+00 : f32
    %259 = vector.broadcast %cst_64 : f32 to vector<1x8xf32>
    %260 = arith.select %253, %258, %259 : vector<1x8xi1>, vector<1x8xf32>
    %261 = arith.addf %228, %260 : vector<1x8xf32>
    %c6_i32 = arith.constant 6 : i32
    %262 = arith.index_cast %c6_i32 : i32 to index
    %c0_65 = arith.constant 0 : index
    %263 = vector.load %arg9[%262, %c0_65] : memref<8x8xf32, #tpu.memory_space<vmem>>, vector<1x8xf32>
    %264 = arith.index_cast %c6_i32 : i32 to index
    %265 = memref.load %arg1[%264] : memref<8xi32, #tpu.memory_space<smem>>
    %266 = vector.broadcast %265 : i32 to vector<1x8xi32>
    %267 = arith.cmpi eq, %19, %266 : vector<1x8xi32>
    %268 = vector.broadcast %c6_i32 : i32 to vector<1x8xi32>
    %269 = arith.cmpi ne, %53, %268 : vector<1x8xi32>
    %270 = arith.andi %267, %269 : vector<1x8xi1>
    %271 = arith.andi %270, %55 : vector<1x8xi1>
    %272 = vector.broadcast %cst_28 : f32 to vector<1x8xf32>
    %273 = arith.addf %263, %272 : vector<1x8xf32>
    %274 = vector.broadcast %263 : vector<1x8xf32> to vector<8x8xf32>
    %275 = arith.cmpf ogt, %48, %274 : vector<8x8xf32>
    %276 = vector.broadcast %273 : vector<1x8xf32> to vector<8x8xf32>
    %277 = arith.cmpf olt, %48, %276 : vector<8x8xf32>
    %278 = arith.andi %275, %277 : vector<8x8xi1>
    %cst_66 = arith.constant 1.000000e+30 : f32
    %279 = vector.broadcast %cst_66 : f32 to vector<8x8xf32>
    %280 = arith.select %278, %48, %279 : vector<8x8xi1>, vector<8x8xf32>
    %cst_67 = arith.constant dense<0x7F800000> : vector<8xf32>
    %281 = vector.multi_reduction <minimumf>, %280, %cst_67 [0] : vector<8x8xf32> to vector<8xf32>
    %282 = vector.shape_cast %281 : vector<8xf32> to vector<1x8xf32>
    %cst_68 = arith.constant 5.000000e+29 : f32
    %283 = vector.broadcast %cst_68 : f32 to vector<1x8xf32>
    %284 = arith.cmpf olt, %282, %283 : vector<1x8xf32>
    %285 = arith.select %284, %282, %50 : vector<1x8xi1>, vector<1x8xf32>
    %286 = arith.andi %271, %46 : vector<1x8xi1>
    %287 = arith.subf %263, %285 : vector<1x8xf32>
    %288 = vector.broadcast %cst_28 : f32 to vector<1x8xf32>
    %289 = arith.addf %287, %288 : vector<1x8xf32>
    %cst_69 = arith.constant 0.000000e+00 : f32
    %290 = vector.broadcast %cst_69 : f32 to vector<1x8xf32>
    %291 = arith.maximumf %289, %290 : vector<1x8xf32>
    %cst_70 = arith.constant 0.000000e+00 : f32
    %292 = vector.broadcast %cst_70 : f32 to vector<1x8xf32>
    %293 = arith.select %286, %291, %292 : vector<1x8xi1>, vector<1x8xf32>
    %294 = arith.addf %261, %293 : vector<1x8xf32>
    %c7_i32 = arith.constant 7 : i32
    %295 = arith.index_cast %c7_i32 : i32 to index
    %c0_71 = arith.constant 0 : index
    %296 = vector.load %arg9[%295, %c0_71] : memref<8x8xf32, #tpu.memory_space<vmem>>, vector<1x8xf32>
    %297 = arith.index_cast %c7_i32 : i32 to index
    %298 = memref.load %arg1[%297] : memref<8xi32, #tpu.memory_space<smem>>
    %299 = vector.broadcast %298 : i32 to vector<1x8xi32>
    %300 = arith.cmpi eq, %19, %299 : vector<1x8xi32>
    %301 = vector.broadcast %c7_i32 : i32 to vector<1x8xi32>
    %302 = arith.cmpi ne, %53, %301 : vector<1x8xi32>
    %303 = arith.andi %300, %302 : vector<1x8xi1>
    %304 = arith.andi %303, %55 : vector<1x8xi1>
    %305 = vector.broadcast %cst_28 : f32 to vector<1x8xf32>
    %306 = arith.addf %296, %305 : vector<1x8xf32>
    %307 = vector.broadcast %296 : vector<1x8xf32> to vector<8x8xf32>
    %308 = arith.cmpf ogt, %48, %307 : vector<8x8xf32>
    %309 = vector.broadcast %306 : vector<1x8xf32> to vector<8x8xf32>
    %310 = arith.cmpf olt, %48, %309 : vector<8x8xf32>
    %311 = arith.andi %308, %310 : vector<8x8xi1>
    %cst_72 = arith.constant 1.000000e+30 : f32
    %312 = vector.broadcast %cst_72 : f32 to vector<8x8xf32>
    %313 = arith.select %311, %48, %312 : vector<8x8xi1>, vector<8x8xf32>
    %cst_73 = arith.constant dense<0x7F800000> : vector<8xf32>
    %314 = vector.multi_reduction <minimumf>, %313, %cst_73 [0] : vector<8x8xf32> to vector<8xf32>
    %315 = vector.shape_cast %314 : vector<8xf32> to vector<1x8xf32>
    %cst_74 = arith.constant 5.000000e+29 : f32
    %316 = vector.broadcast %cst_74 : f32 to vector<1x8xf32>
    %317 = arith.cmpf olt, %315, %316 : vector<1x8xf32>
    %318 = arith.select %317, %315, %50 : vector<1x8xi1>, vector<1x8xf32>
    %319 = arith.andi %304, %46 : vector<1x8xi1>
    %320 = arith.subf %296, %318 : vector<1x8xf32>
    %321 = vector.broadcast %cst_28 : f32 to vector<1x8xf32>
    %322 = arith.addf %320, %321 : vector<1x8xf32>
    %cst_75 = arith.constant 0.000000e+00 : f32
    %323 = vector.broadcast %cst_75 : f32 to vector<1x8xf32>
    %324 = arith.maximumf %322, %323 : vector<1x8xf32>
    %cst_76 = arith.constant 0.000000e+00 : f32
    %325 = vector.broadcast %cst_76 : f32 to vector<1x8xf32>
    %326 = arith.select %319, %324, %325 : vector<1x8xi1>, vector<1x8xf32>
    %327 = arith.addf %294, %326 : vector<1x8xf32>
    %c8_i32_77 = arith.constant 8 : i32
    %328 = vector.shape_cast %327 : vector<1x8xf32> to vector<1x1x8xf32>
    %cst_78 = arith.constant dense<0.000000e+00> : vector<1xf32>
    %329 = vector.multi_reduction <add>, %328, %cst_78 [1, 2] : vector<1x1x8xf32> to vector<1xf32>
    %330 = vector.shape_cast %329 : vector<1xf32> to vector<1x1x1xf32>
    %331 = vector.extract %330[0, 0, 0] : f32 from vector<1x1x1xf32>
    %332 = vector.broadcast %331 : f32 to vector<1x8x128xf32>
    %c0_79 = arith.constant 0 : index
    %c0_80 = arith.constant 0 : index
    %c0_81 = arith.constant 0 : index
    %333 = vector.load %arg7[%c0_79, %c0_80, %c0_81] : memref<1x8x128xf32, #tpu.memory_space<vmem>>, vector<1x8x128xf32>
    tpu.vector_store %arg7[%c0_79, %c0_80, %c0_81], %332 {strides = array<i32>} : memref<1x8x128xf32, #tpu.memory_space<vmem>>, vector<1x8x128xf32>,
    %334 = vector.broadcast %61 : f32 to vector<1x8x128xf32>
    %c0_82 = arith.constant 0 : index
    %c0_83 = arith.constant 0 : index
    %c0_84 = arith.constant 0 : index
    %335 = vector.load %arg8[%c0_82, %c0_83, %c0_84] : memref<1x8x128xf32, #tpu.memory_space<vmem>>, vector<1x8x128xf32>
    tpu.vector_store %arg8[%c0_82, %c0_83, %c0_84], %334 {strides = array<i32>} : memref<1x8x128xf32, #tpu.memory_space<vmem>>, vector<1x8x128xf32>,
    return
  }
  func.func @transform_0(%arg0: i32, %arg1: memref<8xi32, #tpu.memory_space<smem>>) -> (i32, i32) {
    %c0_i32 = arith.constant 0 : i32
    %c0_i32_0 = arith.constant 0 : i32
    %c0_i32_1 = arith.constant 0 : i32
    return %c0_i32, %c0_i32_0 : i32, i32
  }
  func.func @transform_1(%arg0: i32, %arg1: memref<8xi32, #tpu.memory_space<smem>>) -> (i32, i32) {
    %c0_i32 = arith.constant 0 : i32
    %c0_i32_0 = arith.constant 0 : i32
    %c0_i32_1 = arith.constant 0 : i32
    return %c0_i32, %c0_i32_0 : i32, i32
  }
  func.func @transform_2(%arg0: i32, %arg1: memref<8xi32, #tpu.memory_space<smem>>) -> (i32, i32) {
    %c0_i32 = arith.constant 0 : i32
    %c0_i32_0 = arith.constant 0 : i32
    %c0_i32_1 = arith.constant 0 : i32
    return %c0_i32, %c0_i32_0 : i32, i32
  }
  func.func @transform_3(%arg0: i32, %arg1: memref<8xi32, #tpu.memory_space<smem>>) -> (i32, i32, i32) {
    %c0_i32 = arith.constant 0 : i32
    %c0_i32_0 = arith.constant 0 : i32
    %c0_i32_1 = arith.constant 0 : i32
    return %arg0, %c0_i32, %c0_i32_0 : i32, i32, i32
  }
  func.func @transform_4(%arg0: i32, %arg1: memref<8xi32, #tpu.memory_space<smem>>) -> (i32, i32, i32) {
    %c0_i32 = arith.constant 0 : i32
    %c0_i32_0 = arith.constant 0 : i32
    %c0_i32_1 = arith.constant 0 : i32
    return %arg0, %c0_i32, %c0_i32_0 : i32, i32, i32
  }
  func.func @transform_5(%arg0: i32, %arg1: memref<8xi32, #tpu.memory_space<smem>>) -> (i32, i32, i32) {
    %c0_i32 = arith.constant 0 : i32
    %c0_i32_0 = arith.constant 0 : i32
    %c0_i32_1 = arith.constant 0 : i32
    return %arg0, %c0_i32, %c0_i32_0 : i32, i32, i32
  }
  func.func @transform_6(%arg0: i32, %arg1: memref<8xi32, #tpu.memory_space<smem>>) -> (i32, i32, i32) {
    %c0_i32 = arith.constant 0 : i32
    %c0_i32_0 = arith.constant 0 : i32
    %c0_i32_1 = arith.constant 0 : i32
    return %arg0, %c0_i32, %c0_i32_0 : i32, i32, i32
  }
}

</mosaic_0001>

<bundles_post_ra>
// kernel: tpu_custom_call.1
= control target key start
LH: loop header
LB: loop body
LE: loop exit
PB: predicated region body
PF: predicated region fallthrough
CT: control target
= control target key end

     0   :  { %s997_s0 = inlined_call_operand.vmem [shape: s32[8], index: 0, kind: input, shape index: {}]   ;;  %s998_s1 = inlined_call_operand.vmem [shape: f32[8,128], index: 1, kind: input, shape index: {}]   ;;  %s999_s2 = inlined_call_operand.vmem [shape: f32[8,1], index: 2, kind: input, shape index: {}]   ;;  %s1000_s3 = inlined_call_operand.vmem [shape: s32[8,1], index: 3, kind: input, shape index: {}]   ;;  %s1001_s4 = inlined_call_operand.vmem [shape: f32[1,1,8], index: 4, kind: input, shape index: {}]   ;;  %s1002_s5 = inlined_call_operand.vmem [shape: s32[1,1,8], index: 5, kind: input, shape index: {}]   ;;  %s1003_s6 = inlined_call_operand.hbm [shape: f32[1,8,128], index: 6, kind: output, shape index: {0}]   ;;  %s1004_s7 = inlined_call_operand.hbm [shape: f32[1,8,128], index: 7, kind: output, shape index: {1}]  }
   0x1   :  { %s13_s26 = sshll.u32 %s997_s0, 4  ;;  %s14_s26 = int_to_ptr.vmem [resolvable:$true] %s13_s26 }
   0x2   :  { %s538_s27 = scalar_lea.vmem %s14_s26, 16  ;;  %p543_p1 = scmp.lt.s32.totalorder %s14_s26, %s14_s26 }
   0x3   :  { %p539_p0 = scmp.ne.s32.totalorder %s14_s26, %s538_s27  ;;  %p544_p2 = scmp.lt.s32.totalorder %s538_s27, %s538_s27 }
   0x5   :  { %p545_p3 = por %p544_p2, %p543_p1 }
   0x7   :  { %p546_p4 = pnand %p545_p3, %p539_p0 }
   0x9   :  { %549 = shalt.err (!%p546_p4)  }
   0xa   :  { %s600_s28 = smov [#allocation4]  }
   0xb   :  { %16 = dma.vmem_to_smem %s14_s26, 16, %s600_s28, [#allocation3] }
   0xc   :  { %594 = dma.done.wait [#allocation3], 16 }
   0xd   :  { %595 = vsyncadd [#allocation3], 4294967280 }
   0xe   :  { %18 = sfence }
   0xf   :  { %19 = vsyncpa [#allocation6], 0  ;;  %v34_v0 = vld [vmem:[%s998_s1] sm:$0xff]  ;;  %v601_v2 = vmov 0.0   ;;  %vm602_vm0 = vmmov 0  }
  0x10   :  { %v105_v1 = vld [vmem:[%s999_s2] sm:$0xff]  ;;  %521 = vmatprep.subr.mxu0 %v601_v2  ;;  %523 = vmatprep.mubr.msk.f32.mxu0 %vm602_vm0, %v601_v2 }
  0x11   :  { %20 = vsyncpa [#allocation8], 0  ;;  %522 = vmatpush3.xpose.msra.mxu0 %v34_v0  ;;  %v603_v3 = vmov 0   ;;  %v122_v4 = vld [vmem:[%s1000_s3] sm:$0xff]  ;;  %v124_v5 = vlaneseq  ;;  %s188_s1 = sld [smem:[#allocation4]]  ;;  %s512_s12 = sld [smem:[#allocation4 + $0x1]] }
  0x12   :  { %537 = vset.pattern.permute.xlu0 %v603_v3  ;;  %v664_v8 = vld [vmem:[%s1002_s5] sm:$0x1]  ;;  %s668_s13 = sld [smem:[#allocation4 + $0x2]]  ;;  %s672_s3 = sld [smem:[#allocation4 + $0x3]]  ;;  %vm1005_vm4 = vcmask 64512   ;;  %vm604_vm7 = vmmov 1  }
  0x13   :  { %109 = vperm.xlu0 %537, %v105_v1   ;;  %v125_v6 = vshrl.u32 %v124_v5, 7  ;;  %v666_v9 = vand.u32 127, %v124_v5  ;;  %s676_s14 = sld [smem:[#allocation4 + $0x4]]  ;;  %s680_s5 = sld [smem:[#allocation4 + $0x5]]  ;;  %v1008_v18 = vmov 0  ;;  %v1012_v31 = vmov 0 }
  0x14   :  { %524 = vmatmul.mubr.f32.vlgmr.msra.gmra.mrb[0].mxu0 %v34_v0  ;;  %s682_s15 = sld [smem:[#allocation4 + $0x6]]  ;;  %s687_s16 = sld [smem:[#allocation4 + $0x7]]  ;;  %v1014_v35 = vmov 0  ;;  %v1016_v36 = vmov 0  ;;  %v1018_v39 = vmov 0  ;;  %v1038_v52 = vmov 0 }
  0x15   :  { %v659_v7 = vsub.s32 0, %v125_v6  ;;  %vm141_vm1 = vcmp.ne.s32.totalorder %v125_v6, %v666_v9  ;;  %vm131_vm2 = vcmp.lt.s32.totalorder %v666_v9, 8  ;;  %vm191_vm10 = vcmp.ne.s32.totalorder %v666_v9, 0  ;;  %v509_v53 = vld [vmem:[%s1001_s4] ss:$0 sm:$0xff]  ;;  %s605_s19 = smov [#allocation7]  }
  0x16   :  { %vm226_vm13 = vcmp.ne.s32.totalorder %v666_v9, 1  ;;  %vm261_vm15 = vcmp.ne.s32.totalorder %v666_v9, 2  ;;  %s497_s20 = sshll.u32 %s605_s19, 4  ;;  %s498_s20 = int_to_ptr.vmem [resolvable:$true] %s497_s20 }
  0x17   :  { %134 = vperm.xlu0 %537, %v122_v4   ;;  %v139_v11 = vrot.slane %v664_v8, %v659_v7  ;;  %v189_v13 = vstv %s188_s1  ;;  %v224_v14 = vstv %s512_s12  ;;  %s550_s21 = scalar_lea.vmem %s498_s20, 128  ;;  %p555_p6 = scmp.lt.s32.totalorder %s498_s20, %s498_s20 }
  0x18   :  { %v259_v15 = vstv %s668_s13  ;;  %vm190_vm9 = vcmp.eq.s32.totalorder %v664_v8, %v189_v13  ;;  %v294_v17 = vstv %s672_s3  ;;  %vm225_vm12 = vcmp.eq.s32.totalorder %v664_v8, %v224_v14  ;;  %p551_p5 = scmp.ne.s32.totalorder %s498_s20, %s550_s21  ;;  %p556_p7 = scmp.lt.s32.totalorder %s550_s21, %s550_s21 }
  0x19   :  { %v329_v20 = vstv %s676_s14  ;;  %vm260_vm14 = vcmp.eq.s32.totalorder %v664_v8, %v259_v15  ;;  %vm192_vm0 = vmand %vm190_vm9, %vm191_vm10  ;;  %v364_v26 = vstv %s680_s5 }
  0x1a   :  { %v399_v30 = vstv %s682_s15  ;;  %v434_v32 = vstv %s687_s16  ;;  %p557_p8 = por %p556_p7, %p555_p6 }
  0x1c   :  { %p558_p9 = pnand %p557_p8, %p551_p5 }
  0x92   :  { %v670_v10 = vpop.permute.xlu0 %109 }
  0x93   :  { %v118_v54 = vadd.f32 %v509_v53, %v670_v10 }
  0x96   :  { %v135_v12 = vpop.permute.xlu0 %134 }
  0x97   :  { %vm140_vm3 = vcmp.eq.s32.totalorder %v135_v12, %v139_v11 }
  0x98   :  { %vm142_vm5 = vmand %vm140_vm3, %vm141_vm1  ;;  %vm295_vm1 = vcmp.eq.s32.totalorder %v664_v8, %v294_v17 }
  0x99   :  { %vm143_vm6 = vmand %vm142_vm5, %vm131_vm2 }
  0x9a   :  { %vm144_vm8 = vmxor %vm140_vm3, %vm604_vm7  ;;  %v510_v16 = vsel %vm143_vm6, 1.0, %v601_v2  ;;  %vm296_vm3 = vcmp.ne.s32.totalorder %v666_v9, 3  ;;  %vm330_vm6 = vcmp.eq.s32.totalorder %v664_v8, %v329_v20  ;;  %vm331_vm7 = vcmp.ne.s32.totalorder %v666_v9, 4 }
  0x9b   :  { %vm694_vm11 = vmand %vm144_vm8, %vm131_vm2  ;;  %v149_v19 = vsel %vm1005_vm4, %v510_v16, 0.0 }
  0x9c   :  { %v1009_v18 = vsel %vm694_vm11, 4294967295, %v1008_v18  ;;  %v150_v21 = vrot.slane %v149_v19, 4  ;;  %v511_v22 = vsel %vm694_vm11, 1.0, %v601_v2  ;;  %vm227_vm5 = vmand %vm225_vm12, %vm226_vm13 }
  0x9d   :  { %v158_v23 = vsel %vm1005_vm4, %v511_v22, 0.0  ;;  %vm262_vm8 = vmand %vm260_vm14, %vm261_vm15  ;;  %vm365_vm14 = vcmp.eq.s32.totalorder %v664_v8, %v364_v26  ;;  %vm366_vm15 = vcmp.ne.s32.totalorder %v666_v9, 5 }
  0x9e   :  { %v151_v24 = vadd.f32 %v150_v21, %v149_v19  ;;  %v159_v25 = vrot.slane %v158_v23, 4  ;;  %vm714_vm4 = vmand %vm192_vm0, %vm131_vm2 }
  0x9f   :  { %vm297_vm9 = vmand %vm295_vm1, %vm296_vm3  ;;  %vm400_vm1 = vcmp.eq.s32.totalorder %v664_v8, %v399_v30  ;;  %vm401_vm3 = vcmp.ne.s32.totalorder %v666_v9, 6 }
  0xa0   :  { %v160_v27 = vadd.f32 %v159_v25, %v158_v23  ;;  %v152_v28 = vrot.slane %v151_v24, 2  ;;  %vm721_vm10 = vmand %vm227_vm5, %vm131_vm2 }
  0xa1   :  { %v1013_v31 = vsel %vm721_vm10, 4294967295, %v1012_v31  ;;  %vm332_vm12 = vmand %vm330_vm6, %vm331_vm7  ;;  %vm435_vm6 = vcmp.eq.s32.totalorder %v664_v8, %v434_v32  ;;  %vm436_vm7 = vcmp.ne.s32.totalorder %v666_v9, 7 }
  0xa2   :  { %v161_v33 = vrot.slane %v160_v27, 2  ;;  %v153_v34 = vadd.f32 %v152_v28, %v151_v24  ;;  %vm728_vm13 = vmand %vm262_vm8, %vm131_vm2 }
  0xa3   :  { %v1015_v35 = vsel %vm728_vm13, 4294967295, %v1014_v35  ;;  %vm736_vm0 = vmand %vm297_vm9, %vm131_vm2  ;;  %vm1007_vm13 = vcmask 57344  }
  0xa4   :  { %v1017_v36 = vsel %vm736_vm0, 4294967295, %v1016_v36  ;;  %v162_v37 = vadd.f32 %v161_v33, %v160_v27  ;;  %v154_v38 = vrot.slane %v153_v34, 1  ;;  %vm744_vm5 = vmand %vm332_vm12, %vm131_vm2 }
  0xa5   :  { %v1019_v39 = vsel %vm744_vm5, 4294967295, %v1018_v39  ;;  %vm367_vm8 = vmand %vm365_vm14, %vm366_vm15  ;;  %vm1022_vm15 = vnez %v1013_v31 }
  0xa6   :  { %v163_v40 = vrot.slane %v162_v37, 1  ;;  %vm402_vm9 = vmand %vm400_vm1, %vm401_vm3  ;;  %v155_v41 = vadd.f32 %v154_v38, %v153_v34  ;;  %vm1025_vm3 = vnez %v1015_v35 }
  0xa7   :  { %vm437_vm11 = vmand %vm435_vm6, %vm436_vm7 }
  0xa8   :  { %v164_v42 = vadd.f32 %v163_v40, %v162_v37  ;;  %vm368_vm0 = vmand %vm367_vm8, %vm131_vm2 }
  0xa9   :  { %vm403_vm12 = vmand %vm402_vm9, %vm131_vm2 }
  0xaa   :  { %vm165_vm10 = vcmp.gt.f32.partialorder %v164_v42, 0.0  ;;  %vm438_vm5 = vmand %vm437_vm11, %vm131_vm2  ;;  %vm1028_vm2 = vnez %v1017_v36  ;;  %vm1031_vm11 = vnez %v1019_v39 }
  0xab   :  { %v174_v43 = vsel %vm165_vm10, %v155_v41, 0.0  ;;  %vm758_vm14 = vmand %vm714_vm4, %vm165_vm10 }
  0xac   :  { %v176_v45 = vsel %vm1007_vm13, %v174_v43, 0.0  ;;  %vm765_vm1 = vmand %vm1022_vm15, %vm165_vm10 }
  0xad   :  { %177 = vadd.xlane.f32.xlu1 %v176_v45  ;;  %vm771_vm6 = vmand %vm1025_vm3, %vm165_vm10 }
  0xae   :  { %vm777_vm4 = vmand %vm1028_vm2, %vm165_vm10 }
  0xaf   :  { %vm783_vm7 = vmand %vm1031_vm11, %vm165_vm10 }
  0xb0   :  { %vm787_vm8 = vmand %vm368_vm0, %vm165_vm10  ;;  %vm1040_vm0 = vnez %v1009_v18 }
  0xb1   :  { %vm791_vm9 = vmand %vm403_vm12, %vm165_vm10  ;;  %vm1041_vm12 = vcmask 64512  }
  0xb2   :  { %vm795_vm15 = vmand %vm438_vm5, %vm165_vm10 }
  0xb3   :  { %v1039_v52 = vsel %vm795_vm15, 4294967295, %v1038_v52  ;;  %vm1042_vm10 = vmmov %vm1041_vm12  ;;  %vm1055_vm15 = vcmask 64512  }
  0xe7   :  { %v101_v55 = vpop.f32.mrb[0].mxu0 }
  0xe8   :  { %v119_v56 = vmul.f32 2.0, %v101_v55  ;;  %v525_v57 = vpop.f32.mrb[1].mxu0 }
  0xea   :  { %v120_v58 = vsub.f32 %v118_v54, %v119_v56 }
  0xec   :  { %v121_v59 = vmax.f32 %v120_v58, 0.0 }
  0xee   :  { %v805_v60 = vsel %vm1040_vm0, %v121_v59, 1e+30  ;;  %186 = vst.msk [vmem:[#allocation2] sm:$0xff] %vm1041_vm12, %v121_v59 }
  0xef   :  { %v167_v61 = vsel %vm1042_vm10, %v805_v60, inf }
  0xf0   :  { %v168_v62 = vrot.slane %v167_v61, 4 }
  0xf2   :  { %v169_v63 = vmin.f32 %v167_v61, %v168_v62 }
  0xf4   :  { %v170_v0 = vrot.slane %v169_v63, 2 }
  0xf5   :  { %v810_v1 = vld [vmem:[#allocation2] sm:$0x1]  ;;  %v812_v2 = vld [vmem:[#allocation2 + $0x1] sm:$0x1]  ;;  %v814_v3 = vld [vmem:[#allocation2 + $0x2] sm:$0x1] }
  0xf6   :  { %v171_v4 = vmin.f32 %v169_v63, %v170_v0  ;;  %v194_v5 = vadd.f32 1.0, %v810_v1  ;;  %v198_v6 = vrot.slane %v810_v1, %v659_v7  ;;  %v229_v8 = vadd.f32 1.0, %v812_v2  ;;  %v820_v9 = vld [vmem:[#allocation2 + $0x3] sm:$0x1]  ;;  %v835_v18 = vld [vmem:[#allocation2 + $0x4] sm:$0x1] }
  0xf7   :  { %v233_v10 = vrot.slane %v812_v2, %v659_v7  ;;  %v264_v11 = vadd.f32 1.0, %v814_v3  ;;  %v268_v12 = vrot.slane %v814_v3, %v659_v7  ;;  %v299_v13 = vadd.f32 1.0, %v820_v9  ;;  %v850_v23 = vld [vmem:[#allocation2 + $0x5] sm:$0x1]  ;;  %v906_v42 = vld [vmem:[#allocation2 + $0x6] sm:$0x1] }
  0xf8   :  { %v172_v14 = vrot.slane %v171_v4, 1  ;;  %vm829_vm5 = vcmp.gt.f32.partialorder %v805_v60, %v198_v6  ;;  %v203_v16 = vrot.slane %v194_v5, %v659_v7  ;;  %v238_v17 = vrot.slane %v229_v8, %v659_v7  ;;  %v926_v20 = vld [vmem:[#allocation2 + $0x7] sm:$0x1] }
  0xf9   :  { %vm838_vm3 = vcmp.gt.f32.partialorder %v805_v60, %v233_v10  ;;  %vm843_vm2 = vcmp.gt.f32.partialorder %v805_v60, %v268_v12  ;;  %v273_v21 = vrot.slane %v264_v11, %v659_v7  ;;  %v303_v22 = vrot.slane %v820_v9, %v659_v7 }
  0xfa   :  { %v852_v24 = vmin.f32 %v171_v4, %v172_v14  ;;  %vm204_vm11 = vcmp.lt.f32.partialorder %v805_v60, %v203_v16  ;;  %vm239_vm0 = vcmp.lt.f32.partialorder %v805_v60, %v238_v17  ;;  %v308_v25 = vrot.slane %v299_v13, %v659_v7 }
  0xfb   :  { %vm205_vm12 = vmand %vm829_vm5, %vm204_vm11  ;;  %vm860_vm10 = vcmp.lt.f32.partialorder %v805_v60, %v273_v21  ;;  %vm865_vm13 = vcmp.gt.f32.partialorder %v805_v60, %v303_v22  ;;  %v334_v28 = vadd.f32 1.0, %v835_v18  ;;  %v338_v29 = vrot.slane %v835_v18, %v659_v7 }
  0xfc   :  { %v206_v30 = vsel %vm205_vm12, %v805_v60, 1e+30  ;;  %vm240_vm5 = vmand %vm838_vm3, %vm239_vm0  ;;  %vm876_vm11 = vcmp.lt.f32.partialorder %v805_v60, %v308_v25  ;;  %v369_v32 = vadd.f32 1.0, %v850_v23  ;;  %v373_v33 = vrot.slane %v850_v23, %v659_v7 }
  0xfd   :  { %v207_v34 = vsel %vm1055_vm15, %v206_v30, inf  ;;  %v241_v35 = vsel %vm240_vm5, %v805_v60, 1e+30  ;;  %vm275_vm12 = vmand %vm843_vm2, %vm860_vm10  ;;  %vm890_vm3 = vcmp.gt.f32.partialorder %v805_v60, %v338_v29  ;;  %v343_v37 = vrot.slane %v334_v28, %v659_v7 }
  0xfe   :  { %v208_v38 = vrot.slane %v207_v34, 4  ;;  %vm1058_vm0 = vmmov %vm1055_vm15  ;;  %v276_v40 = vsel %vm275_vm12, %v805_v60, 1e+30  ;;  %vm902_vm5 = vcmp.gt.f32.partialorder %v805_v60, %v373_v33  ;;  %v378_v57 = vrot.slane %v369_v32, %v659_v7 }
  0xff   :  { %v242_v39 = vsel %vm1058_vm0, %v241_v35, inf  ;;  %vm310_vm15 = vmand %vm865_vm13, %vm876_vm11  ;;  %vm344_vm10 = vcmp.lt.f32.partialorder %v805_v60, %v343_v37  ;;  %v404_v62 = vadd.f32 1.0, %v906_v42  ;;  %v408_v10 = vrot.slane %v906_v42, %v659_v7 }
 0x100   :  { %v243_v43 = vrot.slane %v242_v39, 4  ;;  %vm1061_vm2 = vmmov %vm1058_vm0  ;;  %v311_v53 = vsel %vm310_vm15, %v805_v60, 1e+30  ;;  %v209_v54 = vmin.f32 %v207_v34, %v208_v38  ;;  %v439_v32 = vadd.f32 1.0, %v926_v20 }
 0x101   :  { %v277_v45 = vsel %vm1061_vm2, %v276_v40, inf  ;;  %vm1062_vm12 = vmmov %vm1058_vm0  ;;  %v413_v14 = vrot.slane %v404_v62, %v659_v7 }
 0x102   :  { %v278_v55 = vrot.slane %v277_v45, 4  ;;  %v312_v56 = vsel %vm1062_vm12, %v311_v53, inf  ;;  %vm345_vm13 = vmand %vm890_vm3, %vm344_vm10  ;;  %v244_v58 = vmin.f32 %v242_v39, %v243_v43  ;;  %v210_v63 = vrot.slane %v209_v54, 2 }
 0x103   :  { %v313_v59 = vrot.slane %v312_v56, 4  ;;  %v346_v61 = vsel %vm345_vm13, %v805_v60, 1e+30  ;;  %vm1063_vm11 = vmmov %vm1058_vm0  ;;  %vm379_vm0 = vcmp.lt.f32.partialorder %v805_v60, %v378_v57 }
 0x104   :  { %v279_v0 = vmin.f32 %v277_v45, %v278_v55  ;;  %v347_v4 = vsel %vm1063_vm11, %v346_v61, inf  ;;  %v245_v5 = vrot.slane %v244_v58, 2  ;;  %vm380_vm3 = vmand %vm902_vm5, %vm379_vm0  ;;  %v211_v11 = vmin.f32 %v209_v54, %v210_v63 }
 0x105   :  { %v314_v6 = vmin.f32 %v312_v56, %v313_v59  ;;  %v348_v8 = vrot.slane %v347_v4, 4  ;;  %v381_v13 = vsel %vm380_vm3, %v805_v60, 1e+30  ;;  %vm1064_vm15 = vmmov %vm1061_vm2  ;;  %vm409_vm5 = vcmp.gt.f32.partialorder %v805_v60, %v408_v10 }
 0x106   :  { %v280_v12 = vrot.slane %v279_v0, 2  ;;  %v246_v15 = vmin.f32 %v244_v58, %v245_v5  ;;  %v382_v19 = vsel %vm1064_vm15, %v381_v13, inf  ;;  %v212_v21 = vrot.slane %v211_v11, 1  ;;  %vm1065_vm13 = vmmov %vm1063_vm11 }
 0x107   :  { %v315_v16 = vrot.slane %v314_v6, 2  ;;  %v349_v17 = vmin.f32 %v347_v4, %v348_v8  ;;  %v383_v25 = vrot.slane %v382_v19, 4  ;;  %vm414_vm2 = vcmp.lt.f32.partialorder %v805_v60, %v413_v14 }
 0x108   :  { %v281_v22 = vmin.f32 %v279_v0, %v280_v12  ;;  %v247_v26 = vrot.slane %v246_v15, 1  ;;  %v213_v29 = vmin.f32 %v211_v11, %v212_v21  ;;  %vm415_vm10 = vmand %vm409_vm5, %vm414_vm2  ;;  %vm1067_vm2 = vnez %v1039_v52 }
 0x109   :  { %v316_v27 = vmin.f32 %v314_v6, %v315_v16  ;;  %v350_v28 = vrot.slane %v349_v17, 2  ;;  %v384_v31 = vmin.f32 %v382_v19, %v383_v25  ;;  %v416_v36 = vsel %vm415_vm10, %v805_v60, 1e+30 }
 0x10a   :  { %v282_v30 = vrot.slane %v281_v22, 1  ;;  %v248_v33 = vmin.f32 %v246_v15, %v247_v26  ;;  %vm214_vm12 = vcmp.lt.f32.partialorder %v213_v29, 5e+29  ;;  %v417_v39 = vsel %vm1065_vm13, %v416_v36, inf }
 0x10b   :  { %v317_v34 = vrot.slane %v316_v27, 1  ;;  %v351_v35 = vmin.f32 %v349_v17, %v350_v28  ;;  %v385_v38 = vrot.slane %v384_v31, 2  ;;  %v215_v40 = vsel %vm214_vm12, %v213_v29, %v852_v24 }
 0x10c   :  { %v283_v37 = vmin.f32 %v281_v22, %v282_v30  ;;  %vm249_vm11 = vcmp.lt.f32.partialorder %v248_v33, 5e+29  ;;  %v217_v45 = vsub.f32 %v810_v1, %v215_v40  ;;  %v418_v1 = vrot.slane %v417_v39, 4 }
 0x10d   :  { %v318_v41 = vmin.f32 %v316_v27, %v317_v34  ;;  %v352_v43 = vrot.slane %v351_v35, 1  ;;  %v250_v53 = vsel %vm249_vm11, %v248_v33, %v852_v24  ;;  %v386_v54 = vmin.f32 %v384_v31, %v385_v38 }
 0x10e   :  { %vm284_vm0 = vcmp.lt.f32.partialorder %v283_v37, 5e+29  ;;  %v252_v55 = vsub.f32 %v812_v2, %v250_v53  ;;  %v218_v58 = vadd.f32 1.0, %v217_v45  ;;  %v419_v12 = vmin.f32 %v417_v39, %v418_v1 }
 0x10f   :  { %v285_v56 = vsel %vm284_vm0, %v283_v37, %v852_v24  ;;  %vm319_vm3 = vcmp.lt.f32.partialorder %v318_v41, 5e+29  ;;  %v353_v57 = vmin.f32 %v351_v35, %v352_v43  ;;  %v387_v62 = vrot.slane %v386_v54, 1 }
 0x110   :  { %v287_v59 = vsub.f32 %v814_v3, %v285_v56  ;;  %v320_v61 = vsel %vm319_vm3, %v318_v41, %v852_v24  ;;  %v253_v63 = vadd.f32 1.0, %v252_v55  ;;  %v219_v4 = vmax.f32 %v218_v58, 0.0 }
 0x111   :  { %v322_v0 = vsub.f32 %v820_v9, %v320_v61  ;;  %vm354_vm15 = vcmp.lt.f32.partialorder %v353_v57, 5e+29  ;;  %v388_v2 = vmin.f32 %v386_v54, %v387_v62  ;;  %v443_v9 = vrot.slane %v926_v20, %v659_v7 }
 0x112   :  { %v288_v5 = vadd.f32 1.0, %v287_v59  ;;  %v355_v6 = vsel %vm354_vm15, %v353_v57, %v852_v24  ;;  %v254_v8 = vmax.f32 %v253_v63, 0.0  ;;  %v220_v3 = vsel %vm758_vm14, %v219_v4, 0.0 }
 0x113   :  { %v323_v10 = vadd.f32 1.0, %v322_v0  ;;  %v357_v11 = vsub.f32 %v835_v18, %v355_v6  ;;  %vm389_vm5 = vcmp.lt.f32.partialorder %v388_v2, 5e+29  ;;  %v420_v44 = vrot.slane %v419_v12, 2 }
 0x114   :  { %v289_v13 = vmax.f32 %v288_v5, 0.0  ;;  %v255_v14 = vsel %vm765_vm1, %v254_v8, 0.0  ;;  %v390_v17 = vsel %vm389_vm5, %v388_v2, %v852_v24  ;;  %v448_v26 = vrot.slane %v439_v32, %v659_v7 }
 0x115   :  { %v324_v15 = vmax.f32 %v323_v10, 0.0  ;;  %v358_v16 = vadd.f32 1.0, %v357_v11  ;;  %v256_v19 = vadd.f32 %v255_v14, %v220_v3  ;;  %v392_v21 = vsub.f32 %v850_v23, %v390_v17 }
 0x116   :  { %v290_v18 = vsel %vm771_vm6, %v289_v13, 0.0  ;;  %v421_v28 = vmin.f32 %v419_v12, %v420_v44  ;;  %vm444_vm14 = vcmp.gt.f32.partialorder %v805_v60, %v443_v9  ;;  %vm449_vm1 = vcmp.lt.f32.partialorder %v805_v60, %v448_v26 }
 0x117   :  { %v325_v22 = vsel %vm777_vm4, %v324_v15, 0.0  ;;  %v359_v25 = vmax.f32 %v358_v16, 0.0  ;;  %v291_v27 = vadd.f32 %v290_v18, %v256_v19  ;;  %v393_v46 = vadd.f32 1.0, %v392_v21  ;;  %vm450_vm6 = vmand %vm444_vm14, %vm449_vm1 }
 0x118   :  { %v422_v23 = vrot.slane %v421_v28, 1  ;;  %v451_v48 = vsel %vm450_vm6, %v805_v60, 1e+30  ;;  %vm1066_vm4 = vmmov %vm1065_vm13  ;;  %vm1068_vm10 = vcmask 57344  }
 0x119   :  { %v360_v29 = vsel %vm783_vm7, %v359_v25, 0.0  ;;  %v326_v47 = vadd.f32 %v325_v22, %v291_v27  ;;  %v394_v30 = vmax.f32 %v393_v46, 0.0  ;;  %v452_v33 = vsel %vm1066_vm4, %v451_v48, inf }
 0x11a   :  { %v423_v32 = vmin.f32 %v421_v28, %v422_v23  ;;  %v453_v34 = vrot.slane %v452_v33, 4 }
 0x11b   :  { %v361_v31 = vadd.f32 %v360_v29, %v326_v47  ;;  %v395_v7 = vsel %vm787_vm8, %v394_v30, 0.0 }
 0x11c   :  { %vm424_vm7 = vcmp.lt.f32.partialorder %v423_v32, 5e+29  ;;  %v454_v36 = vmin.f32 %v452_v33, %v453_v34 }
 0x11d   :  { %v396_v49 = vadd.f32 %v395_v7, %v361_v31  ;;  %v425_v35 = vsel %vm424_vm7, %v423_v32, %v852_v24 }
 0x11e   :  { %v427_v37 = vsub.f32 %v906_v42, %v425_v35  ;;  %v455_v38 = vrot.slane %v454_v36, 2 }
 0x120   :  { %v428_v39 = vadd.f32 1.0, %v427_v37  ;;  %v456_v40 = vmin.f32 %v454_v36, %v455_v38 }
 0x122   :  { %v429_v41 = vmax.f32 %v428_v39, 0.0  ;;  %v457_v60 = vrot.slane %v456_v40, 1 }
 0x124   :  { %v430_v50 = vsel %vm791_vm9, %v429_v41, 0.0  ;;  %v458_v45 = vmin.f32 %v456_v40, %v457_v60 }
 0x125   :  { %v431_v43 = vadd.f32 %v430_v50, %v396_v49 }
 0x126   :  { %vm459_vm8 = vcmp.lt.f32.partialorder %v458_v45, 5e+29 }
 0x127   :  { %v460_v53 = vsel %vm459_vm8, %v458_v45, %v852_v24 }
 0x128   :  { %v462_v54 = vsub.f32 %v926_v20, %v460_v53 }
 0x12a   :  { %v463_v55 = vadd.f32 1.0, %v462_v54 }
 0x12c   :  { %v464_v56 = vmax.f32 %v463_v55, 0.0 }
 0x12e   :  { %v465_v42 = vsel %vm1067_vm2, %v464_v56, 0.0 }
 0x12f   :  { %v466_v57 = vadd.f32 %v465_v42, %v431_v43 }
 0x131   :  { %v467_v58 = vsel %vm1068_vm10, %v466_v57, 0.0 }
 0x132   :  { %468 = vadd.xlane.f32.xlu1 %v467_v58 }
 0x13a   :  { %v178_v59 = vpop.xlane.xlu1 %177 }
 0x13b   :  { %v179_v61 = vrot.slane %v178_v59, 4 }
 0x13d   :  { %v180_v51 = vadd.f32 %v179_v61, %v178_v59 }
 0x13f   :  { %v181_v62 = vrot.slane %v180_v51, 2 }
 0x141   :  { %v182_v63 = vadd.f32 %v181_v62, %v180_v51 }
 0x143   :  { %v183_v0 = vrot.slane %v182_v63, 1 }
 0x145   :  { %v184_v1 = vadd.f32 %v183_v0, %v182_v63 }
 0x147   :  { %526 = vpush %v184_v1 }
 0x178   :  { %s527_s4 = spop %526 }
 0x179   :  { %v479_v24 = vstv %s527_s4 }
 0x17a   :  { %480 = vst [vmem:[#allocation7] sm:$0xff] %v479_v24 }
 0x17b   :  { %561 = shalt.err (!%p558_p9)
}
 0x17c   :  { %s562_s24 = scalar_lea.hbm %s1004_s7, 128 }
 0x17d   :  { %p563_p10 = scmp.ne.s32.totalorder %s1004_s7, %s562_s24  ;;  %p566_p11 = scmp.lt.u32.totalorder %s562_s24, %s1004_s7 }
 0x17f   :  { %p568_p12 = pnand %p566_p11, %p563_p10 }
 0x181   :  { %571 = shalt.err (!%p568_p12)
}
 0x182   :  { %500 = dma.vmem_to_hbm [thread:$0]  %s498_s20, 128, %s1004_s7, [#allocation8]  }
 0x183   :  { %s606_s8 = smov [#allocation5]  }
 0x184   :  { %s487_s0 = sshll.u32 %s606_s8, 4  ;;  %s488_s0 = int_to_ptr.vmem [resolvable:$true] %s487_s0 }
 0x185   :  { %s572_s10 = scalar_lea.vmem %s488_s0, 128  ;;  %p577_p0 = scmp.lt.s32.totalorder %s488_s0, %s488_s0 }
 0x186   :  { %p573_p13 = scmp.ne.s32.totalorder %s488_s0, %s572_s10  ;;  %p578_p1 = scmp.lt.s32.totalorder %s572_s10, %s572_s10 }
 0x188   :  { %p579_p2 = por %p578_p1, %p577_p0 }
 0x18a   :  { %p580_p3 = pnand %p579_p2, %p573_p13 }
 0x1bf   :  { %v469_v52 = vpop.xlane.xlu1 %468 }
 0x1c0   :  { %v470_v20 = vrot.slane %v469_v52, 4 }
 0x1c2   :  { %v471_v4 = vadd.f32 %v470_v20, %v469_v52 }
 0x1c4   :  { %v472_v5 = vrot.slane %v471_v4, 2 }
 0x1c6   :  { %v473_v6 = vadd.f32 %v472_v5, %v471_v4 }
 0x1c8   :  { %v474_v2 = vrot.slane %v473_v6, 1 }
 0x1ca   :  { %v475_v8 = vadd.f32 %v474_v2, %v473_v6 }
 0x1cc   :  { %528 = vpush %v475_v8 }
 0x1fd   :  { %s529_s9 = spop %528 }
 0x1fe   :  { %v477_v10 = vstv %s529_s9 }
 0x1ff   :  { %478 = vst [vmem:[#allocation5] sm:$0xff] %v477_v10 }
 0x200   :  { %583 = shalt.err (!%p580_p3)
}
 0x201   :  { %s584_s2 = scalar_lea.hbm %s1003_s6, 128 }
 0x202   :  { %p585_p4 = scmp.ne.s32.totalorder %s1003_s6, %s584_s2  ;;  %p588_p5 = scmp.lt.u32.totalorder %s584_s2, %s1003_s6 }
 0x204   :  { %p590_p6 = pnand %p588_p5, %p585_p4 }
 0x206   :  { %593 = shalt.err (!%p590_p6)
}
 0x207   :  { %490 = dma.vmem_to_hbm [thread:$0]  %s488_s0, 128, %s1003_s6, [#allocation6]  }
 0x208   :  { %596 = dma.done.wait [#allocation6], 128  }
 0x209   :  { %597 = vsyncadd [#allocation6], 4294967168 }
 0x20a   :  { %598 = dma.done.wait [#allocation8], 128  }
 0x20b   :  { %599 = vsyncadd [#allocation8], 4294967168 }
 0x20c   :  { %507 = vsyncpa [#allocation6], 1 }
 0x20d   :  { %508 = vsyncpa [#allocation8], 1 }

</bundles_post_ra>
